<compile_context>
chip_gen: v6e
topology: v6e:2x2x1
jax: 0.10.0
libtpu: 0.0.40
codegen_flags: <defaults>
</compile_context>

<pallas_src>
import functools

import jax
import jax.numpy as jnp
from jax.experimental import pallas as pl
from jax.experimental.pallas import tpu as pltpu


def _round_up(a, b):
    return (a + b - 1) // b * b


def _cdiv(a, b):
    return -(-a // b)


def _conv_out_len(n, k):
    # Conv1d(kernel=k, stride=2, padding=k-1) output length, then trim (k-1).
    p = k - 1
    return (n + 2 * p - k) // 2 + 1 - p


# ----------------------------------------------------------------------------
# Fused two-layer kernel (one (batch, output-row tile) grid point per call)
# ----------------------------------------------------------------------------
def _make_fused_kernel(*, TL2, HR, CT):
    def kernel(rm_ref, rh_ref, w1_ref, w2_ref, b2_ref, o_ref):
        w1 = w1_ref[...]                                     # (Wr, 2*C1p) bf16

        # ---- layer 1: one MXU pass -> pair-packed intermediate --------------
        #   g[m] = ( relu(conv1)[2m] | relu(conv1)[2m+1] ), causal zeros and
        #   the bias are already folded into the packed input / weights.
        g_main = jnp.maximum(
            jnp.dot(rm_ref[0], w1, preferred_element_type=jnp.float32), 0.0
        ).astype(jnp.bfloat16)                               # (TL2, 2*C1p)
        g_halo = jnp.maximum(
            jnp.dot(rh_ref[0], w1, preferred_element_type=jnp.float32), 0.0
        ).astype(jnp.bfloat16)                               # (HR, 2*C1p)
        g = jnp.concatenate([g_main, g_halo], axis=0)        # (TL2+HR, 2*C1p)

        # ---- layer 2: ceil(K/2) paired taps, contraction 2*C1p each ---------
        acc = jnp.dot(g[0:TL2], w2_ref[0], preferred_element_type=jnp.float32)
        for c in range(1, CT):
            acc += jnp.dot(g[c:c + TL2], w2_ref[c],
                           preferred_element_type=jnp.float32)

        o_ref[0] = jnp.maximum(acc + b2_ref[...], 0.0).astype(o_ref.dtype)

    return kernel


# ----------------------------------------------------------------------------
# Wrapper: layout prep + pallas_call
# ----------------------------------------------------------------------------
def _fused_forward(x, w1, b1, w2, b2, K, out_dtype=jnp.bfloat16):
    B, T, Cin = x.shape
    assert K >= 2, "kernel_size must be >= 2"
    P = K - 1
    C1 = w1.shape[0]
    C2 = w2.shape[0]
    assert w1.shape == (C1, Cin, K) and w2.shape == (C2, C1, K)
    assert b1.shape == (C1,) and b2.shape == (C2,)

    L1 = _conv_out_len(T, K)
    L2 = _conv_out_len(L1, K)
    assert L1 > 0 and L2 > 0, "input too short for this subsampling"

    # ---- static tiling parameters -------------------------------------------
    HR = 16                                # halo rows (intermediate pairs)
    CT = (K + 1) // 2                      # paired layer-2 taps
    assert CT <= HR
    C1p = _round_up(C1, 128)
    C2p = _round_up(C2, 128)
    Cina = Cin + 1                         # + ones channel (carries b1 / causal zero)
    S = K + 2                              # packed input slots per pair row
    Wr = _round_up(S * Cina, 128)          # layer-1 contraction width

    # Tile of layer-2 output rows.  Keep tiles large, but guarantee >= 2 grid
    # points when B == 1 so a v7x megacore can split the work.
    nt = max(1, _cdiv(L2, 512))
    if B * nt < 2 and L2 > 16:
        nt = 2
    TL2 = max(16, _round_up(_cdiv(L2, nt), 16))
    num_tiles = _cdiv(L2, TL2)
    L2p = num_tiles * TL2
    NR = L2p + HR                          # packed rows incl. halo slack

    # ---- packed layer-1 lhs: R[m, j*Cina:(j+1)*Cina] = x_aug_pad[4m + j] -----
    # x_aug appends a ones channel; left pad 3*(K-1) zeros gives the shifted
    # frame in which  h'[t'] = relu(sum_k w1[k] x_pad[2t'+k] + b1*ones_pad[2t'+K-1])
    # and z[s] = relu(sum_k w2[k] h'[2s+k] + b2).
    ones = jnp.ones((B, T, 1), x.dtype)
    x_aug = jnp.concatenate([x, ones], axis=-1).astype(jnp.bfloat16)
    pad_left = 3 * P
    need = 4 * NR + S
    if pad_left + T < need:
        xp = jnp.pad(x_aug, ((0, 0), (pad_left, need - pad_left - T), (0, 0)))
    else:
        xp = jnp.pad(x_aug, ((0, 0), (pad_left, 0), (0, 0)))[:, :need, :]
    R = jnp.concatenate([xp[:, j:j + 4 * NR:4, :] for j in range(S)], axis=-1)
    if Wr > S * Cina:
        R = jnp.pad(R, ((0, 0), (0, 0), (0, Wr - S * Cina)))      # (B, NR, Wr)

    # ---- layer-1 weights: (Wr, 2*C1p), bias folded via the ones channel ------
    w1_t = jnp.transpose(w1, (2, 1, 0)).astype(jnp.float32)       # (K, Cin, C1)
    W1 = jnp.zeros((S, Cina, 2 * C1p), jnp.float32)
    W1 = W1.at[0:K, 0:Cin, 0:C1].set(w1_t)                        # even rows: slots 0..K-1
    W1 = W1.at[K - 1, Cin, 0:C1].set(b1.astype(jnp.float32))      # bias gate at last tap
    W1 = W1.at[2:K + 2, 0:Cin, C1p:C1p + C1].set(w1_t)            # odd rows: slots 2..K+1
    W1 = W1.at[K + 1, Cin, C1p:C1p + C1].set(b1.astype(jnp.float32))
    W1 = W1.reshape(S * Cina, 2 * C1p)
    W1 = jnp.pad(W1, ((0, Wr - S * Cina), (0, 0))).astype(jnp.bfloat16)

    # ---- layer-2 weights: CT paired taps of shape (2*C1p, C2p) ---------------
    w2_t = jnp.transpose(w2, (2, 1, 0)).astype(jnp.float32)       # (K, C1, C2)
    W2 = jnp.zeros((CT, 2 * C1p, C2p), jnp.float32)
    for c in range(CT):
        W2 = W2.at[c, 0:C1, 0:C2].set(w2_t[2 * c])
        if 2 * c + 1 < K:
            W2 = W2.at[c, C1p:C1p + C1, 0:C2].set(w2_t[2 * c + 1])
    W2 = W2.astype(jnp.bfloat16)

    b2p = jnp.pad(b2.astype(jnp.float32), (0, C2p - C2)).reshape(1, C2p)

    kernel = _make_fused_kernel(TL2=TL2, HR=HR, CT=CT)

    flops = 2 * B * num_tiles * ((TL2 + HR) * Wr * 2 * C1p
                                 + CT * TL2 * 2 * C1p * C2p)
    bytes_accessed = (2 * R.size * 2 + W1.size * 2 + W2.size * 2 + b2p.size * 4
                      + B * L2p * C2p * jnp.dtype(out_dtype).itemsize)

    out = pl.pallas_call(
        kernel,
        out_shape=jax.ShapeDtypeStruct((B, L2p, C2p), out_dtype),
        grid=(B, num_tiles),
        in_specs=[
            pl.BlockSpec((1, TL2, Wr), lambda b, j: (b, j, 0)),               # packed x (tile)
            pl.BlockSpec((1, HR, Wr),
                         lambda b, j: (b, (j + 1) * (TL2 // HR), 0)),         # packed x (halo)
            pl.BlockSpec((Wr, 2 * C1p), lambda b, j: (0, 0)),                 # W1 (even|odd)
            pl.BlockSpec((CT, 2 * C1p, C2p), lambda b, j: (0, 0, 0)),         # W2 paired taps
            pl.BlockSpec((1, C2p), lambda b, j: (0, 0)),                      # b2
        ],
        out_specs=pl.BlockSpec((1, TL2, C2p), lambda b, j: (b, j, 0)),
        compiler_params=pltpu.CompilerParams(
            dimension_semantics=("parallel", "parallel"),
            vmem_limit_bytes=48 * 1024 * 1024,
        ),
        cost_estimate=pl.CostEstimate(flops=int(flops), transcendentals=0,
                                      bytes_accessed=int(bytes_accessed)),
    )(R, R, W1, W2, b2p)

    if L2p != L2 or C2p != C2:
        out = out[:, :L2, :C2]
    return out


# ----------------------------------------------------------------------------
# Module-level forward (matches CausalConv1dSubsampling.forward semantics)
# ----------------------------------------------------------------------------
@functools.partial(jax.jit, static_argnames=("kernel_size",))
def causal_conv1d_subsampling(x, x_mask, w1, b1, w2, b2, kernel_size):
    # x: (B, T, Cin); x_mask: (B, 1, T) bool or None
    y = _fused_forward(x, w1, b1, w2, b2, kernel_size)
    if x_mask is None:
        return y, None
    # Mask subsampling kept exactly as in the PyTorch module (plain slicing in
    # the JAX wrapper -- not worth a kernel).
    return y, x_mask[:, :, :-2:2][:, :, :-2:2]


# ----------------------------------------------------------------------------
# Pure-JAX reference (lax.conv) for correctness checking
# ----------------------------------------------------------------------------
def _ref_layer(x_nct, w, b, K):
    y = jax.lax.conv_general_dilated(
        x_nct, w, window_strides=(2,), padding=[(K - 1, K - 1)],
        dimension_numbers=("NCH", "OIH", "NCH"))
    y = y + b[None, :, None]
    y = jnp.maximum(y, 0.0)
    if K > 1:
        y = y[:, :, :-(K - 1)]
    return y


def reference_forward(x, w1, b1, w2, b2, K):
    h = jnp.transpose(x, (0, 2, 1))      # (B, Cin, T)
    h = _ref_layer(h, w1, b1, K)
    h = _ref_layer(h, w2, b2, K)
    return jnp.transpose(h, (0, 2, 1))   # (B, Lout, Cout)


if __name__ == "__main__":
    # (B, T, Cin, C1, C2, K): toy config + multi-tile/odd-K + even-K fuzz.
    configs = [
        (2, 16, 8, 16, 16, 3),
        (1, 300, 9, 40, 24, 5),
        (2, 64, 5, 12, 20, 4),
    ]
    key = jax.random.PRNGKey(0)
    for (B, T, Cin, C1, C2, K) in configs:
        key, k1, k2, k3, k4, k5 = jax.random.split(key, 6)
        x = jax.random.normal(k1, (B, T, Cin), jnp.float32)
        x_mask = jnp.ones((B, 1, T), dtype=bool)

        # PyTorch Conv1d weight layout: (Cout, Cin, K)
        w1 = 0.1 * jax.random.normal(k2, (C1, Cin, K), jnp.float32)
        b1 = 0.1 * jax.random.normal(k3, (C1,), jnp.float32)
        w2 = 0.1 * jax.random.normal(k4, (C2, C1, K), jnp.float32)
        b2 = 0.1 * jax.random.normal(k5, (C2,), jnp.float32)

        y, y_mask = causal_conv1d_subsampling(x, x_mask, w1, b1, w2, b2, K)
        y = jax.block_until_ready(y)

        y_ref = reference_forward(x, w1, b1, w2, b2, K)
        assert y.shape == y_ref.shape, (y.shape, y_ref.shape)
        # bf16 matmul inputs / bf16 intermediate + output with f32 accumulation
        # -> loose-ish tolerance vs the f32 reference.
        yf = y.astype(jnp.float32)
        err = float(jnp.max(jnp.abs(yf - y_ref)))
        assert jnp.allclose(yf, y_ref, atol=5e-2, rtol=5e-2), (
            "mismatch vs reference conv", (B, T, Cin, C1, C2, K), err)

        m_ref = x_mask[:, :, :-2:2][:, :, :-2:2]
        assert y_mask.shape == m_ref.shape and bool(jnp.all(y_mask == m_ref))

    print("KERNEL_OK")
</pallas_src>

<mosaic_0001>
module attributes {stable_mosaic.version = 11 : i64} {
  func.func @kernel(%arg0: i32, %arg1: i32, %arg2: memref<1x16x128xbf16, #tpu.memory_space<vmem>>, %arg3: memref<1x16x128xbf16, #tpu.memory_space<vmem>>, %arg4: memref<128x256xbf16, #tpu.memory_space<vmem>>, %arg5: memref<2x256x128xbf16, #tpu.memory_space<vmem>>, %arg6: memref<1x128xf32, #tpu.memory_space<vmem>>, %arg7: memref<1x16x128xbf16, #tpu.memory_space<vmem>>) attributes {dimension_semantics = [#tpu.dimension_semantics<parallel>, #tpu.dimension_semantics<parallel>], iteration_bounds = array<i64: 2, 1>, scalar_prefetch = 0 : i64, scratch_operands = 0 : i64, tpu.core_type = #tpu.core_type<tc>, window_params = [{transform_indices = @transform_0, window_bounds = array<i64: 1, 16, 128>}, {transform_indices = @transform_1, window_bounds = array<i64: 1, 16, 128>}, {pipeline_mode = #tpu.pipeline_mode<synchronous>, transform_indices = @transform_2, window_bounds = array<i64: 128, 256>}, {pipeline_mode = #tpu.pipeline_mode<synchronous>, transform_indices = @transform_3, window_bounds = array<i64: 2, 256, 128>}, {pipeline_mode = #tpu.pipeline_mode<synchronous>, transform_indices = @transform_4, window_bounds = array<i64: 1, 128>}, {transform_indices = @transform_5, window_bounds = array<i64: 1, 16, 128>}]} {
    %c0 = arith.constant 0 : index
    %c0_0 = arith.constant 0 : index
    %0 = vector.load %arg4[%c0, %c0_0] : memref<128x256xbf16, #tpu.memory_space<vmem>>, vector<128x256xbf16>
    %c0_1 = arith.constant 0 : index
    %c0_2 = arith.constant 0 : index
    %c0_3 = arith.constant 0 : index
    %1 = vector.load %arg2[%c0_1, %c0_2, %c0_3] : memref<1x16x128xbf16, #tpu.memory_space<vmem>>, vector<1x16x128xbf16>
    %2 = vector.shape_cast %1 : vector<1x16x128xbf16> to vector<16x128xbf16>
    %cst = arith.constant dense<0.000000e+00> : vector<16x256xf32>
    %3 = tpu.matmul %2, %0, %cst {dimension_numbers = #tpu.dot_dimension_numbers<[1], [0], [0], [1], [0, 0, 1, 1], [], []>} : vector<16x128xbf16>, vector<128x256xbf16>, vector<16x256xf32> -> vector<16x256xf32>
    %cst_4 = arith.constant 0.000000e+00 : f32
    %4 = vector.broadcast %cst_4 : f32 to vector<16x256xf32>
    %5 = arith.maximumf %3, %4 : vector<16x256xf32>
    %6 = arith.truncf %5 : vector<16x256xf32> to vector<16x256xbf16>
    %c0_5 = arith.constant 0 : index
    %c0_6 = arith.constant 0 : index
    %c0_7 = arith.constant 0 : index
    %7 = vector.load %arg3[%c0_5, %c0_6, %c0_7] : memref<1x16x128xbf16, #tpu.memory_space<vmem>>, vector<1x16x128xbf16>
    %8 = vector.shape_cast %7 : vector<1x16x128xbf16> to vector<16x128xbf16>
    %cst_8 = arith.constant dense<0.000000e+00> : vector<16x256xf32>
    %9 = tpu.matmul %8, %0, %cst_8 {dimension_numbers = #tpu.dot_dimension_numbers<[1], [0], [0], [1], [0, 0, 1, 1], [], []>} : vector<16x128xbf16>, vector<128x256xbf16>, vector<16x256xf32> -> vector<16x256xf32>
    %cst_9 = arith.constant 0.000000e+00 : f32
    %10 = vector.broadcast %cst_9 : f32 to vector<16x256xf32>
    %11 = arith.maximumf %9, %10 : vector<16x256xf32>
    %12 = arith.truncf %11 : vector<16x256xf32> to vector<16x256xbf16>
    %13 = tpu.concatenate %6, %12 in 0 : vector<16x256xbf16>, vector<16x256xbf16> -> vector<32x256xbf16>
    %14 = vector.extract_strided_slice %13 {offsets = [0, 0], sizes = [16, 256], strides = [1, 1]} : vector<32x256xbf16> to vector<16x256xbf16>
    %c0_10 = arith.constant 0 : index
    %c0_11 = arith.constant 0 : index
    %c0_12 = arith.constant 0 : index
    %15 = vector.load %arg5[%c0_10, %c0_11, %c0_12] : memref<2x256x128xbf16, #tpu.memory_space<vmem>>, vector<1x256x128xbf16>
    %16 = vector.shape_cast %15 : vector<1x256x128xbf16> to vector<256x128xbf16>
    %cst_13 = arith.constant dense<0.000000e+00> : vector<16x128xf32>
    %17 = tpu.matmul %14, %16, %cst_13 {dimension_numbers = #tpu.dot_dimension_numbers<[1], [0], [0], [1], [0, 0, 1, 1], [], []>} : vector<16x256xbf16>, vector<256x128xbf16>, vector<16x128xf32> -> vector<16x128xf32>
    %18 = vector.extract_strided_slice %13 {offsets = [1, 0], sizes = [16, 256], strides = [1, 1]} : vector<32x256xbf16> to vector<16x256xbf16>
    %c1 = arith.constant 1 : index
    %c0_14 = arith.constant 0 : index
    %c0_15 = arith.constant 0 : index
    %19 = vector.load %arg5[%c1, %c0_14, %c0_15] : memref<2x256x128xbf16, #tpu.memory_space<vmem>>, vector<1x256x128xbf16>
    %20 = vector.shape_cast %19 : vector<1x256x128xbf16> to vector<256x128xbf16>
    %cst_16 = arith.constant dense<0.000000e+00> : vector<16x128xf32>
    %21 = tpu.matmul %18, %20, %cst_16 {dimension_numbers = #tpu.dot_dimension_numbers<[1], [0], [0], [1], [0, 0, 1, 1], [], []>} : vector<16x256xbf16>, vector<256x128xbf16>, vector<16x128xf32> -> vector<16x128xf32>
    %22 = arith.addf %17, %21 : vector<16x128xf32>
    %c0_17 = arith.constant 0 : index
    %c0_18 = arith.constant 0 : index
    %23 = vector.load %arg6[%c0_17, %c0_18] : memref<1x128xf32, #tpu.memory_space<vmem>>, vector<1x128xf32>
    %24 = vector.broadcast %23 : vector<1x128xf32> to vector<16x128xf32>
    %25 = arith.addf %22, %24 : vector<16x128xf32>
    %cst_19 = arith.constant 0.000000e+00 : f32
    %26 = vector.broadcast %cst_19 : f32 to vector<16x128xf32>
    %27 = arith.maximumf %25, %26 : vector<16x128xf32>
    %28 = arith.truncf %27 : vector<16x128xf32> to vector<16x128xbf16>
    %c0_20 = arith.constant 0 : index
    %c0_21 = arith.constant 0 : index
    %c0_22 = arith.constant 0 : index
    %29 = vector.load %arg7[%c0_20, %c0_21, %c0_22] : memref<1x16x128xbf16, #tpu.memory_space<vmem>>, vector<1x16x128xbf16>
    %30 = vector.shape_cast %29 : vector<1x16x128xbf16> to vector<16x128xbf16>
    %31 = vector.shape_cast %28 : vector<16x128xbf16> to vector<1x16x128xbf16>
    tpu.vector_store %arg7[%c0_20, %c0_21, %c0_22], %31 {strides = array<i32>} : memref<1x16x128xbf16, #tpu.memory_space<vmem>>, vector<1x16x128xbf16>,
    return
  }
  func.func @transform_0(%arg0: i32, %arg1: i32) -> (i32, i32, i32) {
    %c0_i32 = arith.constant 0 : i32
    %c0_i32_0 = arith.constant 0 : i32
    return %arg0, %arg1, %c0_i32 : i32, i32, i32
  }
  func.func @transform_1(%arg0: i32, %arg1: i32) -> (i32, i32, i32) {
    %c1_i32 = arith.constant 1 : i32
    %0 = arith.addi %arg1, %c1_i32 : i32
    %c1_i32_0 = arith.constant 1 : i32
    %1 = arith.muli %0, %c1_i32_0 : i32
    %c0_i32 = arith.constant 0 : i32
    %c0_i32_1 = arith.constant 0 : i32
    return %arg0, %1, %c0_i32 : i32, i32, i32
  }
  func.func @transform_2(%arg0: i32, %arg1: i32) -> (i32, i32) {
    %c0_i32 = arith.constant 0 : i32
    %c0_i32_0 = arith.constant 0 : i32
    %c0_i32_1 = arith.constant 0 : i32
    return %c0_i32, %c0_i32_0 : i32, i32
  }
  func.func @transform_3(%arg0: i32, %arg1: i32) -> (i32, i32, i32) {
    %c0_i32 = arith.constant 0 : i32
    %c0_i32_0 = arith.constant 0 : i32
    %c0_i32_1 = arith.constant 0 : i32
    %c0_i32_2 = arith.constant 0 : i32
    return %c0_i32, %c0_i32_0, %c0_i32_1 : i32, i32, i32
  }
  func.func @transform_4(%arg0: i32, %arg1: i32) -> (i32, i32) {
    %c0_i32 = arith.constant 0 : i32
    %c0_i32_0 = arith.constant 0 : i32
    %c0_i32_1 = arith.constant 0 : i32
    return %c0_i32, %c0_i32_0 : i32, i32
  }
  func.func @transform_5(%arg0: i32, %arg1: i32) -> (i32, i32, i32) {
    %c0_i32 = arith.constant 0 : i32
    %c0_i32_0 = arith.constant 0 : i32
    return %arg0, %arg1, %c0_i32 : i32, i32, i32
  }
}

</mosaic_0001>

<bundles_post_ra>
// kernel: causal_conv1d_subsampling.1
= control target key start
LH: loop header
LB: loop body
LE: loop exit
PB: predicated region body
PF: predicated region fallthrough
CT: control target
= control target key end

     0   :  { %s1302_s18 = smov 0   ;;  %s1304_s19 = smov 0   ;;  %s1500_s0 = inlined_call_operand.vmem [shape: bf16[2,32,128], index: 0, kind: input, shape index: {}, may-alias: {0,1}]   ;;  %s1501_s1 = inlined_call_operand.vmem [shape: bf16[2,32,128], index: 1, kind: input, shape index: {}, may-alias: {0,1}]   ;;  %s1502_s2 = inlined_call_operand.vmem [shape: bf16[128,256], index: 2, kind: input, shape index: {}]   ;;  %s1503_s3 = inlined_call_operand.vmem [shape: bf16[2,256,128], index: 3, kind: input, shape index: {}]   ;;  %s1504_s4 = inlined_call_operand.vmem [shape: f32[1,128], index: 4, kind: input, shape index: {}]   ;;  %s1505_s5 = inlined_call_operand.vmem [shape: bf16[2,16,128], index: 5, kind: output, shape index: {}]  }
   0x1   :  { %s1306_s20 = smov 0  }
   0x2 LB: > { %s27_s21 = sadd.s32 1, %s1265_s19  ;;  %p1014_p0 = scmp.ge.s32.totalorder %s1269_s20, 1  ;;  %s1269_s20 = sphi %s1306_s20, %s15_s20   ;;  %s1265_s19 = sphi %s1304_s19, %s1507_s19   ;;  %s1261_s18 = sphi %s1302_s18, %s1506_s18  }
   0x3   : > { %p29_p1 = scmp.ge.s32.totalorder %s27_s21, 2  ;;  %p229_p2 = scmp.lt.s32.totalorder %s1269_s20, 3 }
   0x5   : > { %s1509_s21 = smov (%p29_p1, %s27_s21), 0  ;;  %p230_p3 = pnand %p1014_p0, %p229_p2 }
   0x6   : > { %p276_p4 = scmp.lt.s32.totalorder (!%p230_p3), %s1261_s18, 1 }
   0x7   : > { %233 = sbr.rel (%p230_p3) target bundleno = 467 (0x1d3), region = 40 }
   0xc   : > { %v1189_v0 = vld [vmem:[%s1502_s2 + $0x74] ss:$8 sps:$4 sm:$0xff]   ;;  %v1191_v1 = vld [vmem:[%s1502_s2 + $0x70] ss:$8 sps:$4 sm:$0xff]   ;;  %v1271_v2 = vmov 0   ;;  %s1511_s18 = smov (!%p276_p4, %s1261_s18), 1 }
   0xd   : > { %444 = vmatprep.mubr.bf16.mxu0 %v1271_v2  ;;  %501 = vmatprep.mubr.bf16.mxu1 %v1271_v2  ;;  %v1192_v3 = vld [vmem:[%s1502_s2 + $0x64] ss:$8 sps:$4 sm:$0xff]   ;;  %v1194_v4 = vld [vmem:[%s1502_s2 + $0x60] ss:$8 sps:$4 sm:$0xff]   ;;  %v1195_v5 = vld [vmem:[%s1502_s2 + $0x54] ss:$8 sps:$4 sm:$0xff]  }
   0xe   : > { %412 = vmatprep.subr.bf16.mxu0 %v1189_v0  ;;  %469 = vmatprep.subr.bf16.mxu1 %v1189_v0  ;;  %s1108_s7 = sshll.u32 %s1511_s18, 4  ;;  %v1197_v6 = vld [vmem:[%s1502_s2 + $0x50] ss:$8 sps:$4 sm:$0xff]   ;;  %v1198_v7 = vld [vmem:[%s1502_s2 + $0x44] ss:$8 sps:$4 sm:$0xff]   ;;  %s1111_s28 = sshll.u32 %s1511_s18, 3 }
   0xf   : > { %413 = vmatpush1.bf16.msra.mxu0 %v1191_v1  ;;  %470 = vmatpush1.bf16.msra.mxu1 %v1191_v1  ;;  %s1341_s10 = sadd.s32 8, %s1108_s7  ;;  %s1349_s15 = scalar_lea.vmem %s1500_s0, %s1108_s7  ;;  %v1200_v8 = vld [vmem:[%s1502_s2 + $0x40] ss:$8 sps:$4 sm:$0xff]   ;;  %v1201_v9 = vld [vmem:[%s1502_s2 + $0x34] ss:$8 sps:$4 sm:$0xff]  }
  0x10   : > { %414 = vmatprep.subr.bf16.mxu0 %v1192_v3  ;;  %471 = vmatprep.subr.bf16.mxu1 %v1192_v3  ;;  %s294_s22 = scalar_lea.vmem %s1501_s1, %s1341_s10  ;;  %v1203_v10 = vld [vmem:[%s1502_s2 + $0x30] ss:$8 sps:$4 sm:$0xff]   ;;  %v1204_v11 = vld [vmem:[%s1502_s2 + $0x24] ss:$8 sps:$4 sm:$0xff]   ;;  %v1206_v12 = vld [vmem:[%s1502_s2 + $0x20] ss:$8 sps:$4 sm:$0xff]   ;;  %s305_s6 = scalar_lea.vmem %s1505_s5, %s1111_s28 }
  0x11   : > { %v1207_v13 = vld [vmem:[%s1502_s2 + $0x14] ss:$8 sps:$4 sm:$0xff]   ;;  %v1209_v14 = vld [vmem:[%s1502_s2 + $0x10] ss:$8 sps:$4 sm:$0xff]   ;;  %v1210_v15 = vld [vmem:[%s1502_s2 + $0x4] ss:$8 sps:$4 sm:$0xff]  }
  0x12   : > { %v1212_v16 = vld [vmem:[%s1502_s2] ss:$8 sps:$4 sm:$0xff]   ;;  %v1215_v17 = vld [vmem:[%s1503_s3 + $0x78] sm:$0xff]   ;;  %v1217_v23 = vld [vmem:[%s1503_s3 + $0x70] sm:$0xff]   ;;  %vm583_vm0 = vsmask.f32 7424 }
  0x13   : > { %415 = vmatpush1.bf16.msra.mxu0 %v1194_v4  ;;  %472 = vmatpush1.bf16.msra.mxu1 %v1194_v4  ;;  %v1213_v18 = vld [vmem:[%s1349_s15] sm:$0xff]   ;;  %v1219_v20 = vld [vmem:[%s1503_s3 + $0xf8] sm:$0xff]   ;;  %v1223_v24 = vld [vmem:[%s1503_s3 + $0xf0] sm:$0xff]  }
  0x14   : > { %416 = vmatprep.subr.bf16.mxu0 %v1195_v5  ;;  %473 = vmatprep.subr.bf16.mxu1 %v1195_v5  ;;  %v1214_v19 = vld [vmem:[%s294_s22] sm:$0xff]   ;;  %v1216_v21 = vld [vmem:[%s1503_s3 + $0x38] sm:$0xff]   ;;  %v1218_v25 = vld [vmem:[%s1503_s3 + $0x30] sm:$0xff]  }
  0x15   : > { %v1220_v22 = vld [vmem:[%s1503_s3 + $0xb8] sm:$0xff]   ;;  %v1224_v26 = vld [vmem:[%s1503_s3 + $0xb0] sm:$0xff]   ;;  %v1221_v27 = vld [vmem:[%s1503_s3 + $0x68] sm:$0xff]  }
  0x16   : > { %v1227_v28 = vld [vmem:[%s1503_s3 + $0xe8] sm:$0xff]   ;;  %v1225_v31 = vld [vmem:[%s1503_s3 + $0x60] sm:$0xff]   ;;  %v1229_v34 = vld [vmem:[%s1503_s3 + $0x58] sm:$0xff]  }
  0x17   : > { %417 = vmatpush1.bf16.msra.mxu0 %v1197_v6  ;;  %474 = vmatpush1.bf16.msra.mxu1 %v1197_v6  ;;  %v1222_v29 = vld [vmem:[%s1503_s3 + $0x28] sm:$0xff]   ;;  %v1231_v32 = vld [vmem:[%s1503_s3 + $0xe0] sm:$0xff]   ;;  %v1230_v35 = vld [vmem:[%s1503_s3 + $0x18] sm:$0xff]  }
  0x18   : > { %418 = vmatprep.subr.bf16.mxu0 %v1198_v7  ;;  %475 = vmatprep.subr.bf16.mxu1 %v1198_v7  ;;  %v1228_v30 = vld [vmem:[%s1503_s3 + $0xa8] sm:$0xff]   ;;  %v1226_v33 = vld [vmem:[%s1503_s3 + $0x20] sm:$0xff]   ;;  %v1233_v37 = vld [vmem:[%s1503_s3 + $0x50] sm:$0xff]  }
  0x19   : > { %v1232_v36 = vld [vmem:[%s1503_s3 + $0xa0] sm:$0xff]   ;;  %v1234_v38 = vld [vmem:[%s1503_s3 + $0x10] sm:$0xff]   ;;  %v1235_v39 = vld [vmem:[%s1503_s3 + $0xd8] sm:$0xff]  }
  0x1a   : > { %v1236_v40 = vld [vmem:[%s1503_s3 + $0x98] sm:$0xff]   ;;  %v1237_v41 = vld [vmem:[%s1503_s3 + $0x48] sm:$0xff]   ;;  %v1239_v43 = vld [vmem:[%s1503_s3 + $0xd0] sm:$0xff]  }
  0x1b   : > { %419 = vmatpush1.bf16.msra.mxu0 %v1200_v8  ;;  %476 = vmatpush1.bf16.msra.mxu1 %v1200_v8  ;;  %v1238_v42 = vld [vmem:[%s1503_s3 + $0x8] sm:$0xff]   ;;  %v1240_v44 = vld [vmem:[%s1503_s3 + $0x90] sm:$0xff]   ;;  %v1241_v45 = vld [vmem:[%s1503_s3 + $0x40] sm:$0xff]  }
  0x1c   : > { %420 = vmatprep.subr.bf16.mxu0 %v1201_v9  ;;  %477 = vmatprep.subr.bf16.mxu1 %v1201_v9  ;;  %v1242_v46 = vld [vmem:[%s1503_s3] sm:$0xff]   ;;  %v1243_v47 = vld [vmem:[%s1503_s3 + $0xc8] sm:$0xff]  }
  0x1d   : > { %v1244_v48 = vld [vmem:[%s1503_s3 + $0x88] sm:$0xff]   ;;  %v1245_v49 = vld [vmem:[%s1503_s3 + $0xc0] sm:$0xff]  }
  0x1e   : > { %v1246_v50 = vld [vmem:[%s1503_s3 + $0x80] sm:$0xff]  }
  0x1f   : > { %421 = vmatpush1.bf16.msra.mxu0 %v1203_v10  ;;  %478 = vmatpush1.bf16.msra.mxu1 %v1203_v10 }
  0x20   : > { %422 = vmatprep.subr.bf16.mxu0 %v1204_v11  ;;  %479 = vmatprep.subr.bf16.mxu1 %v1204_v11 }
  0x23   : > { %423 = vmatpush1.bf16.msra.mxu0 %v1206_v12  ;;  %480 = vmatpush1.bf16.msra.mxu1 %v1206_v12 }
  0x24   : > { %424 = vmatprep.subr.bf16.mxu0 %v1207_v13  ;;  %481 = vmatprep.subr.bf16.mxu1 %v1207_v13 }
  0x27   : > { %425 = vmatpush1.bf16.msra.mxu0 %v1209_v14  ;;  %482 = vmatpush1.bf16.msra.mxu1 %v1209_v14 }
  0x28   : > { %426 = vmatprep.subr.bf16.mxu0 %v1210_v15  ;;  %483 = vmatprep.subr.bf16.mxu1 %v1210_v15 }
  0x2b   : > { %427 = vmatpush1.bf16.msra.mxu0 %v1212_v16  ;;  %484 = vmatpush1.bf16.msra.mxu1 %v1212_v16 }
  0x2c   : > { %1142 = vmatprep.subr.bf16.mxu1 %v1215_v17  ;;  %1120 = vmatprep.subr.bf16.mxu0 %v1219_v20 }
  0x2e   : > { %445 = vmatmul.mubr.bf16.vlgmr.msra.gmra.mxu0 %v1213_v18  ;;  %502 = vmatmul.mubr.bf16.vlgmr.msra.gmra.mxu1 %v1214_v19 }
  0x2f   : > { %1143 = vmatpush3.bf16.msra.mxu1 %v1216_v21  ;;  %1121 = vmatpush3.bf16.msra.mxu0 %v1220_v22 }
  0x30   : > { %1144 = vmatprep.subr.bf16.mxu1 %v1217_v23  ;;  %1122 = vmatprep.subr.bf16.mxu0 %v1223_v24 }
  0x33   : > { %1145 = vmatpush3.bf16.msra.mxu1 %v1218_v25  ;;  %1123 = vmatpush3.bf16.msra.mxu0 %v1224_v26 }
  0x34   : > { %1146 = vmatprep.subr.bf16.mxu1 %v1221_v27  ;;  %1124 = vmatprep.subr.bf16.mxu0 %v1227_v28 }
  0x37   : > { %1147 = vmatpush3.bf16.msra.mxu1 %v1222_v29  ;;  %1125 = vmatpush3.bf16.msra.mxu0 %v1228_v30 }
  0x38   : > { %1148 = vmatprep.subr.bf16.mxu1 %v1225_v31  ;;  %1126 = vmatprep.subr.bf16.mxu0 %v1231_v32  ;;  %v1103_v31 = vld [vmem:[%s1504_s4] ss:$0 sm:$0xff] }
  0x3b   : > { %1149 = vmatpush3.bf16.msra.mxu1 %v1226_v33  ;;  %1127 = vmatpush3.bf16.msra.mxu0 %v1232_v36 }
  0x3c   : > { %1150 = vmatprep.subr.bf16.mxu1 %v1229_v34  ;;  %1128 = vmatprep.subr.bf16.mxu0 %v1235_v39 }
  0x3f   : > { %1151 = vmatpush3.bf16.msra.mxu1 %v1230_v35  ;;  %1129 = vmatpush3.bf16.msra.mxu0 %v1236_v40 }
  0x40   : > { %1152 = vmatprep.subr.bf16.mxu1 %v1233_v37  ;;  %1130 = vmatprep.subr.bf16.mxu0 %v1239_v43 }
  0x43   : > { %1153 = vmatpush3.bf16.msra.mxu1 %v1234_v38  ;;  %1131 = vmatpush3.bf16.msra.mxu0 %v1240_v44 }
  0x44   : > { %1154 = vmatprep.subr.bf16.mxu1 %v1237_v41  ;;  %1132 = vmatprep.subr.bf16.mxu0 %v1243_v47 }
  0x47   : > { %1155 = vmatpush3.bf16.msra.mxu1 %v1238_v42  ;;  %1133 = vmatpush3.bf16.msra.mxu0 %v1244_v48 }
  0x48   : > { %1156 = vmatprep.subr.bf16.mxu1 %v1241_v45  ;;  %1134 = vmatprep.subr.bf16.mxu0 %v1245_v49 }
  0x4b   : > { %1157 = vmatpush3.bf16.msra.mxu1 %v1242_v46  ;;  %1135 = vmatpush3.bf16.msra.mxu0 %v1246_v50 }
  0xee   : > { %v446_v51 = vpop.f32.mrf.mxu0  ;;  %v503_v52 = vpop.f32.mrf.mxu1 }
  0xef   : > { %v455_v57 = vmax.f32 %v446_v51, 0.0  ;;  %v512_v60 = vmax.f32 %v503_v52, 0.0 }
  0xf0   : > { %v448_v53 = vpop.f32.mrf.mxu0  ;;  %v505_v54 = vpop.f32.mrf.mxu1 }
  0xf1   : > { %v456_v63 = vmax.f32 %v448_v53, 0.0  ;;  %v513_v3 = vmax.f32 %v505_v54, 0.0 }
  0xf2   : > { %v450_v55 = vpop.f32.mrf.mxu0  ;;  %v507_v56 = vpop.f32.mrf.mxu1 }
  0xf3   : > { %v457_v58 = vmax.f32 %v450_v55, 0.0  ;;  %v514_v59 = vmax.f32 %v507_v56, 0.0 }
  0xf4   : > { %v452_v61 = vpop.f32.mrf.mxu0  ;;  %v509_v62 = vpop.f32.mrf.mxu1 }
  0xf5   : > { %v459_v0 = vpack.c.bf16 %v457_v58, %v455_v57  ;;  %v458_v1 = vmax.f32 %v452_v61, 0.0  ;;  %v515_v2 = vmax.f32 %v509_v62, 0.0  ;;  %v516_v4 = vpack.c.bf16 %v514_v59, %v512_v60 }
  0xf7   : > { %v587_v5 = vshll.u32 %v459_v0, 16  ;;  %v460_v6 = vpack.c.bf16 %v458_v1, %v456_v63  ;;  %v517_v7 = vpack.c.bf16 %v515_v2, %v513_v3  ;;  %v585_v10 = vshrl.u32 %v459_v0, 16 }
  0xf8   : > { %v592_v11 = vshll.u32 %v516_v4, 16 }
  0xf9   : > { %v589_v8 = vrot.slane %v587_v5, 1  ;;  %v599_v9 = vshll.u32 %v460_v6, 16  ;;  %875 = vmatprep.mubr.bf16.mxu1 %v460_v6  ;;  %v604_v12 = vshll.u32 %v517_v7, 16  ;;  %v597_v13 = vshrl.u32 %v460_v6, 16 }
  0xfa   : > { %876 = vmatmul.mubr.bf16.vlgmr.msra.gmra.mxu1 %v459_v0  ;;  %v594_v18 = vrot.slane %v592_v11, 1 }
  0xfb   : > { %v601_v14 = vrot.slane %v599_v9, 1  ;;  %v590_v15 = vor.u32 %v589_v8, %v585_v10  ;;  %v606_v16 = vrot.slane %v604_v12, 1 }
  0xfd   : > { %v602_v17 = vor.u32 %v601_v14, %v597_v13  ;;  %v595_v20 = vsel %vm583_vm0, %v590_v15, %v594_v18 }
  0xff   : > { %v607_v19 = vsel %vm583_vm0, %v602_v17, %v606_v16 }
 0x100   : > { %738 = vmatprep.mubr.bf16.mxu0 %v607_v19 }
 0x101   : > { %739 = vmatmul.mubr.bf16.vlgmr.msra.gmra.mxu0 %v595_v20 }
 0x1ba   : > { %v1158_v21 = vpop.f32.mrf.mxu1 }
 0x1bc   : > { %v1159_v22 = vpop.f32.mrf.mxu1 }
 0x1bd   : > { %v1160_v26 = vadd.f32 %v1159_v22, %v1158_v21 }
 0x1be   : > { %v1161_v23 = vpop.f32.mrf.mxu1 }
 0x1c0   : > { %v1162_v28 = vpop.f32.mrf.mxu1 }
 0x1c1   : > { %v1136_v24 = vpop.f32.mrf.mxu0  ;;  %v1163_v33 = vadd.f32 %v1162_v28, %v1161_v23 }
 0x1c3   : > { %v1137_v25 = vpop.f32.mrf.mxu0 }
 0x1c4   : > { %v1138_v27 = vadd.f32 %v1137_v25, %v1136_v24 }
 0x1c5   : > { %v1139_v29 = vpop.f32.mrf.mxu0 }
 0x1c6   : > { %v878_v30 = vadd.f32 %v1160_v26, %v1138_v27 }
 0x1c7   : > { %v1140_v32 = vpop.f32.mrf.mxu0 }
 0x1c8   : > { %v1141_v34 = vadd.f32 %v1140_v32, %v1139_v29  ;;  %v891_v35 = vadd.f32 %v1103_v31, %v878_v30 }
 0x1ca   : > { %v881_v36 = vadd.f32 %v1163_v33, %v1141_v34  ;;  %v893_v38 = vmax.f32 %v891_v35, 0.0 }
 0x1cc   : > { %v892_v37 = vadd.f32 %v1103_v31, %v881_v36 }
 0x1ce   : > { %v894_v39 = vmax.f32 %v892_v37, 0.0 }
 0x1d0   : > { %v1117_v40 = vpack.c.bf16 %v894_v39, %v893_v38 }
 0x1d2   : > { %1118 = vst [vmem:[%s305_s6] sm:$0xff] %v1117_v40  }
 0x1d3 PF: > { %s15_s20 = sadd.s32 1, %s1269_s20   ;;  %s1506_s18 = smov %s1265_s19 }
 0x1d4   : > { %p12_p5 = scmp.ge.s32.totalorder %s15_s20, 4   ;;  %s1507_s19 = smov %s1509_s21 }
 0x1d6   :  { %14 = sbr.rel (!%p12_p5) target bundleno = 2 (0x2), region = 74 }

</bundles_post_ra>
